<compile_context>
chip_gen: v6e
topology: v6e:2x2x1
jax: 0.10.0
libtpu: 0.0.40
codegen_flags: <defaults>
</compile_context>

<pallas_src>
import functools

import jax
import jax.numpy as jnp
from jax.experimental import pallas as pl
from jax.experimental.pallas import tpu as pltpu


_LANES = 1024          # C: lane width per block (multiple of 128)
_BLOCK_ROWS = 256      # R: sublane rows per block (multiple of 8)
_BLOCK_ELEMS = _LANES * _BLOCK_ROWS   # 262144 elems = 1 MiB f32 per block


def _round_up(n, m):
    return ((n + m - 1) // m) * m


def _mlp_kernel(params_ref, x_ref, o_ref, *, m, H):
    # params_ref: (3*H + 1,) f32 in SMEM -> [w1[0:H], b1[0:H], w2[0:H], b2]
    # x_ref/o_ref: (R, C) f32 blocks in VMEM (batch laid out densely).
    x = x_ref[...]                                    # (R, C)
    b2 = params_ref[3 * H]                            # scalar from SMEM
    acc = jnp.full(x.shape, b2, dtype=jnp.float32)    # fc2 bias

    # Unrolled loop over the 10 hidden units: pure full-vreg VPU (+EUP) work,
    # no XLU reduce, no (H, TILE) intermediate.
    for j in range(H):
        h = params_ref[j] * x + params_ref[H + j]     # fc1 unit j (scalar w/b)
        if m == 1:
            # jax.nn.sigmoid keeps exp on the EUP; exact math preserves the
            # 1e-5 correctness tolerance (approx vrcp would loosen it).
            h = jax.nn.sigmoid(h)
        else:
            h = jnp.maximum(h, 0.0)
        acc = acc + params_ref[2 * H + j] * h         # fc2 unit j (scalar w)

    o_ref[...] = acc.astype(o_ref.dtype)


def pack_params(w1, b1, w2, b2):
    """Pack PyTorch-layout params (H,1),(H,),(1,H),(1,) into one flat (3H+1,) array."""
    H = w1.shape[0]
    return jnp.concatenate([
        jnp.asarray(w1, jnp.float32).reshape(H),
        jnp.asarray(b1, jnp.float32).reshape(H),
        jnp.asarray(w2, jnp.float32).reshape(H),
        jnp.asarray(b2, jnp.float32).reshape(1),
    ])


@functools.partial(jax.jit, static_argnames=("m",))
def net_forward_packed(x, params, *, m=1):
    """x: (N, 1) float32; params: (3H+1,) packed. Returns (N, 1) float32."""
    N, in_dim = x.shape
    assert in_dim == 1, "Net.fc1 has in_dim == 1"
    H = (params.shape[0] - 1) // 3

    # (N, 1) -> (N,) is a pure reshape (no transpose).
    x_flat = x.astype(jnp.float32).reshape(N)

    if N <= _LANES:
        # Tiny batch: one (1, cols) block == full array (exempt from 8x128).
        cols = _round_up(max(N, 1), 128)
        rows, block_rows, grid_n = 1, 1, 1
    elif N <= _BLOCK_ELEMS:
        # Single dense block, rows padded to a multiple of 8.
        cols = _LANES
        rows = _round_up(-(-N // cols), 8)
        block_rows, grid_n = rows, 1
    else:
        # Multi-block grid of 1 MiB payloads; keep the grid even so both
        # v7x TensorCores get work (harmless on v5e/v6e's single TC).
        cols = _LANES
        grid_n = -(-N // _BLOCK_ELEMS)
        if grid_n % 2:
            grid_n += 1
        block_rows = _BLOCK_ROWS
        rows = grid_n * block_rows

    n_pad = rows * cols
    # Only the ragged tail is zero-padded; padded lanes compute garbage that
    # is sliced off below (output block is fully overwritten every step).
    x2d = jnp.pad(x_flat, (0, n_pad - N)).reshape(rows, cols)

    kernel = functools.partial(_mlp_kernel, m=m, H=H)

    out2d = pl.pallas_call(
        kernel,
        out_shape=jax.ShapeDtypeStruct((rows, cols), jnp.float32),
        grid=(grid_n,),
        in_specs=[
            # 31 parameter scalars resident in SMEM (no VMEM DMA, free
            # scalar broadcast into vector ops).
            pl.BlockSpec(memory_space=pltpu.MemorySpace.SMEM),
            # Dense (block_rows, cols) x block per grid step.
            pl.BlockSpec((block_rows, cols), lambda i: (i, 0)),
        ],
        out_specs=pl.BlockSpec((block_rows, cols), lambda i: (i, 0)),
        compiler_params=pltpu.CompilerParams(
            dimension_semantics=("parallel",)),
    )(params, x2d)

    return out2d.reshape(n_pad)[:N].reshape(N, 1)


def net_forward(x, w1, b1, w2, b2, *, m=1):
    """Convenience wrapper taking PyTorch-layout weights."""
    return net_forward_packed(x, pack_params(w1, b1, w2, b2), m=m)


def init_params(key, in_dim=1, H=10, out_dim=1):
    """Deterministic init mimicking PyTorch nn.Linear (uniform +-1/sqrt(fan_in))."""
    k1, k2, k3, k4 = jax.random.split(key, 4)
    bound1 = 1.0 / jnp.sqrt(in_dim)
    bound2 = 1.0 / jnp.sqrt(H)
    w1 = jax.random.uniform(k1, (H, in_dim), jnp.float32, -bound1, bound1)
    b1 = jax.random.uniform(k2, (H,), jnp.float32, -bound1, bound1)
    w2 = jax.random.uniform(k3, (out_dim, H), jnp.float32, -bound2, bound2)
    b2 = jax.random.uniform(k4, (out_dim,), jnp.float32, -bound2, bound2)
    return w1, b1, w2, b2


def reference_forward(x, w1, b1, w2, b2, *, m=1):
    h = x @ w1.T + b1
    h = jax.nn.sigmoid(h) if m == 1 else jnp.maximum(h, 0.0)
    return h @ w2.T + b2


if __name__ == "__main__":
    key = jax.random.PRNGKey(0)
    kx, kx2, kx3, kp = jax.random.split(key, 4)

    in_dim, H, out_dim = 1, 10, 1
    w1, b1, w2, b2 = init_params(kp, in_dim, H, out_dim)
    params = pack_params(w1, b1, w2, b2)  # pack once, reuse across calls

    # Small batch (single tiny block), m == 1 (sigmoid) and m != 1 (relu).
    N = 8
    x = jax.random.normal(kx, (N, in_dim), jnp.float32)

    out = jax.block_until_ready(net_forward_packed(x, params, m=1))
    ref = reference_forward(x, w1, b1, w2, b2, m=1)
    assert out.shape == (N, out_dim)
    assert jnp.allclose(out, ref, atol=1e-5, rtol=1e-5)

    out2 = jax.block_until_ready(net_forward_packed(x, params, m=0))
    ref2 = reference_forward(x, w1, b1, w2, b2, m=0)
    assert jnp.allclose(out2, ref2, atol=1e-5, rtol=1e-5)

    # Medium batch: single (1, 1024) block with ragged-tail padding.
    N2 = 1000
    x2 = jax.random.normal(kx2, (N2, in_dim), jnp.float32)
    out3 = jax.block_until_ready(net_forward_packed(x2, params, m=1))
    ref3 = reference_forward(x2, w1, b1, w2, b2, m=1)
    assert out3.shape == (N2, out_dim)
    assert jnp.allclose(out3, ref3, atol=1e-5, rtol=1e-5)

    # Larger batch: multi-block grid (3 blocks rounded up to 4 for v7x),
    # exercising the pipelined (256, 1024) tiles and tail padding.
    N3 = 600_000
    x3 = jax.random.normal(kx3, (N3, in_dim), jnp.float32)
    out4 = jax.block_until_ready(net_forward_packed(x3, params, m=1))
    ref4 = reference_forward(x3, w1, b1, w2, b2, m=1)
    assert out4.shape == (N3, out_dim)
    assert jnp.allclose(out4, ref4, atol=1e-5, rtol=1e-5)

    print("KERNEL_OK")
</pallas_src>

<mosaic_0001>
module attributes {stable_mosaic.version = 11 : i64} {
  func.func @_mlp_kernel(%arg0: i32, %arg1: memref<31xf32, #tpu.memory_space<smem>>, %arg2: memref<1x128xf32, #tpu.memory_space<vmem>>, %arg3: memref<1x128xf32, #tpu.memory_space<vmem>>) attributes {dimension_semantics = [#tpu.dimension_semantics<parallel>], iteration_bounds = array<i64: 1>, scalar_prefetch = 0 : i64, scratch_operands = 0 : i64, tpu.core_type = #tpu.core_type<tc>, window_params = [{transform_indices = @transform_0, window_bounds = array<i64: 31>}, {transform_indices = @transform_1, window_bounds = array<i64: 1, 128>}, {transform_indices = @transform_2, window_bounds = array<i64: 1, 128>}]} {
    %c0 = arith.constant 0 : index
    %c0_0 = arith.constant 0 : index
    %0 = vector.load %arg2[%c0, %c0_0] : memref<1x128xf32, #tpu.memory_space<vmem>>, vector<1x128xf32>
    %c30 = arith.constant 30 : index
    %1 = memref.load %arg1[%c30] : memref<31xf32, #tpu.memory_space<smem>>
    %2 = vector.broadcast %1 : f32 to vector<1x128xf32>
    %c0_1 = arith.constant 0 : index
    %3 = memref.load %arg1[%c0_1] : memref<31xf32, #tpu.memory_space<smem>>
    %4 = vector.broadcast %3 : f32 to vector<1x128xf32>
    %5 = arith.mulf %4, %0 : vector<1x128xf32>
    %c10 = arith.constant 10 : index
    %6 = memref.load %arg1[%c10] : memref<31xf32, #tpu.memory_space<smem>>
    %7 = vector.broadcast %6 : f32 to vector<1x128xf32>
    %8 = arith.addf %5, %7 : vector<1x128xf32>
    %9 = arith.negf %8 : vector<1x128xf32>
    %10 = math.exp %9 : vector<1x128xf32>
    %cst = arith.constant 1.000000e+00 : f32
    %11 = vector.broadcast %cst : f32 to vector<1x128xf32>
    %12 = arith.addf %11, %10 : vector<1x128xf32>
    %13 = arith.divf %11, %12 : vector<1x128xf32>
    %c20 = arith.constant 20 : index
    %14 = memref.load %arg1[%c20] : memref<31xf32, #tpu.memory_space<smem>>
    %15 = vector.broadcast %14 : f32 to vector<1x128xf32>
    %16 = arith.mulf %15, %13 : vector<1x128xf32>
    %17 = arith.addf %2, %16 : vector<1x128xf32>
    %c1 = arith.constant 1 : index
    %18 = memref.load %arg1[%c1] : memref<31xf32, #tpu.memory_space<smem>>
    %19 = vector.broadcast %18 : f32 to vector<1x128xf32>
    %20 = arith.mulf %19, %0 : vector<1x128xf32>
    %c11 = arith.constant 11 : index
    %21 = memref.load %arg1[%c11] : memref<31xf32, #tpu.memory_space<smem>>
    %22 = vector.broadcast %21 : f32 to vector<1x128xf32>
    %23 = arith.addf %20, %22 : vector<1x128xf32>
    %24 = arith.negf %23 : vector<1x128xf32>
    %25 = math.exp %24 : vector<1x128xf32>
    %cst_2 = arith.constant 1.000000e+00 : f32
    %26 = vector.broadcast %cst_2 : f32 to vector<1x128xf32>
    %27 = arith.addf %26, %25 : vector<1x128xf32>
    %28 = arith.divf %26, %27 : vector<1x128xf32>
    %c21 = arith.constant 21 : index
    %29 = memref.load %arg1[%c21] : memref<31xf32, #tpu.memory_space<smem>>
    %30 = vector.broadcast %29 : f32 to vector<1x128xf32>
    %31 = arith.mulf %30, %28 : vector<1x128xf32>
    %32 = arith.addf %17, %31 : vector<1x128xf32>
    %c2 = arith.constant 2 : index
    %33 = memref.load %arg1[%c2] : memref<31xf32, #tpu.memory_space<smem>>
    %34 = vector.broadcast %33 : f32 to vector<1x128xf32>
    %35 = arith.mulf %34, %0 : vector<1x128xf32>
    %c12 = arith.constant 12 : index
    %36 = memref.load %arg1[%c12] : memref<31xf32, #tpu.memory_space<smem>>
    %37 = vector.broadcast %36 : f32 to vector<1x128xf32>
    %38 = arith.addf %35, %37 : vector<1x128xf32>
    %39 = arith.negf %38 : vector<1x128xf32>
    %40 = math.exp %39 : vector<1x128xf32>
    %cst_3 = arith.constant 1.000000e+00 : f32
    %41 = vector.broadcast %cst_3 : f32 to vector<1x128xf32>
    %42 = arith.addf %41, %40 : vector<1x128xf32>
    %43 = arith.divf %41, %42 : vector<1x128xf32>
    %c22 = arith.constant 22 : index
    %44 = memref.load %arg1[%c22] : memref<31xf32, #tpu.memory_space<smem>>
    %45 = vector.broadcast %44 : f32 to vector<1x128xf32>
    %46 = arith.mulf %45, %43 : vector<1x128xf32>
    %47 = arith.addf %32, %46 : vector<1x128xf32>
    %c3 = arith.constant 3 : index
    %48 = memref.load %arg1[%c3] : memref<31xf32, #tpu.memory_space<smem>>
    %49 = vector.broadcast %48 : f32 to vector<1x128xf32>
    %50 = arith.mulf %49, %0 : vector<1x128xf32>
    %c13 = arith.constant 13 : index
    %51 = memref.load %arg1[%c13] : memref<31xf32, #tpu.memory_space<smem>>
    %52 = vector.broadcast %51 : f32 to vector<1x128xf32>
    %53 = arith.addf %50, %52 : vector<1x128xf32>
    %54 = arith.negf %53 : vector<1x128xf32>
    %55 = math.exp %54 : vector<1x128xf32>
    %cst_4 = arith.constant 1.000000e+00 : f32
    %56 = vector.broadcast %cst_4 : f32 to vector<1x128xf32>
    %57 = arith.addf %56, %55 : vector<1x128xf32>
    %58 = arith.divf %56, %57 : vector<1x128xf32>
    %c23 = arith.constant 23 : index
    %59 = memref.load %arg1[%c23] : memref<31xf32, #tpu.memory_space<smem>>
    %60 = vector.broadcast %59 : f32 to vector<1x128xf32>
    %61 = arith.mulf %60, %58 : vector<1x128xf32>
    %62 = arith.addf %47, %61 : vector<1x128xf32>
    %c4 = arith.constant 4 : index
    %63 = memref.load %arg1[%c4] : memref<31xf32, #tpu.memory_space<smem>>
    %64 = vector.broadcast %63 : f32 to vector<1x128xf32>
    %65 = arith.mulf %64, %0 : vector<1x128xf32>
    %c14 = arith.constant 14 : index
    %66 = memref.load %arg1[%c14] : memref<31xf32, #tpu.memory_space<smem>>
    %67 = vector.broadcast %66 : f32 to vector<1x128xf32>
    %68 = arith.addf %65, %67 : vector<1x128xf32>
    %69 = arith.negf %68 : vector<1x128xf32>
    %70 = math.exp %69 : vector<1x128xf32>
    %cst_5 = arith.constant 1.000000e+00 : f32
    %71 = vector.broadcast %cst_5 : f32 to vector<1x128xf32>
    %72 = arith.addf %71, %70 : vector<1x128xf32>
    %73 = arith.divf %71, %72 : vector<1x128xf32>
    %c24 = arith.constant 24 : index
    %74 = memref.load %arg1[%c24] : memref<31xf32, #tpu.memory_space<smem>>
    %75 = vector.broadcast %74 : f32 to vector<1x128xf32>
    %76 = arith.mulf %75, %73 : vector<1x128xf32>
    %77 = arith.addf %62, %76 : vector<1x128xf32>
    %c5 = arith.constant 5 : index
    %78 = memref.load %arg1[%c5] : memref<31xf32, #tpu.memory_space<smem>>
    %79 = vector.broadcast %78 : f32 to vector<1x128xf32>
    %80 = arith.mulf %79, %0 : vector<1x128xf32>
    %c15 = arith.constant 15 : index
    %81 = memref.load %arg1[%c15] : memref<31xf32, #tpu.memory_space<smem>>
    %82 = vector.broadcast %81 : f32 to vector<1x128xf32>
    %83 = arith.addf %80, %82 : vector<1x128xf32>
    %84 = arith.negf %83 : vector<1x128xf32>
    %85 = math.exp %84 : vector<1x128xf32>
    %cst_6 = arith.constant 1.000000e+00 : f32
    %86 = vector.broadcast %cst_6 : f32 to vector<1x128xf32>
    %87 = arith.addf %86, %85 : vector<1x128xf32>
    %88 = arith.divf %86, %87 : vector<1x128xf32>
    %c25 = arith.constant 25 : index
    %89 = memref.load %arg1[%c25] : memref<31xf32, #tpu.memory_space<smem>>
    %90 = vector.broadcast %89 : f32 to vector<1x128xf32>
    %91 = arith.mulf %90, %88 : vector<1x128xf32>
    %92 = arith.addf %77, %91 : vector<1x128xf32>
    %c6 = arith.constant 6 : index
    %93 = memref.load %arg1[%c6] : memref<31xf32, #tpu.memory_space<smem>>
    %94 = vector.broadcast %93 : f32 to vector<1x128xf32>
    %95 = arith.mulf %94, %0 : vector<1x128xf32>
    %c16 = arith.constant 16 : index
    %96 = memref.load %arg1[%c16] : memref<31xf32, #tpu.memory_space<smem>>
    %97 = vector.broadcast %96 : f32 to vector<1x128xf32>
    %98 = arith.addf %95, %97 : vector<1x128xf32>
    %99 = arith.negf %98 : vector<1x128xf32>
    %100 = math.exp %99 : vector<1x128xf32>
    %cst_7 = arith.constant 1.000000e+00 : f32
    %101 = vector.broadcast %cst_7 : f32 to vector<1x128xf32>
    %102 = arith.addf %101, %100 : vector<1x128xf32>
    %103 = arith.divf %101, %102 : vector<1x128xf32>
    %c26 = arith.constant 26 : index
    %104 = memref.load %arg1[%c26] : memref<31xf32, #tpu.memory_space<smem>>
    %105 = vector.broadcast %104 : f32 to vector<1x128xf32>
    %106 = arith.mulf %105, %103 : vector<1x128xf32>
    %107 = arith.addf %92, %106 : vector<1x128xf32>
    %c7 = arith.constant 7 : index
    %108 = memref.load %arg1[%c7] : memref<31xf32, #tpu.memory_space<smem>>
    %109 = vector.broadcast %108 : f32 to vector<1x128xf32>
    %110 = arith.mulf %109, %0 : vector<1x128xf32>
    %c17 = arith.constant 17 : index
    %111 = memref.load %arg1[%c17] : memref<31xf32, #tpu.memory_space<smem>>
    %112 = vector.broadcast %111 : f32 to vector<1x128xf32>
    %113 = arith.addf %110, %112 : vector<1x128xf32>
    %114 = arith.negf %113 : vector<1x128xf32>
    %115 = math.exp %114 : vector<1x128xf32>
    %cst_8 = arith.constant 1.000000e+00 : f32
    %116 = vector.broadcast %cst_8 : f32 to vector<1x128xf32>
    %117 = arith.addf %116, %115 : vector<1x128xf32>
    %118 = arith.divf %116, %117 : vector<1x128xf32>
    %c27 = arith.constant 27 : index
    %119 = memref.load %arg1[%c27] : memref<31xf32, #tpu.memory_space<smem>>
    %120 = vector.broadcast %119 : f32 to vector<1x128xf32>
    %121 = arith.mulf %120, %118 : vector<1x128xf32>
    %122 = arith.addf %107, %121 : vector<1x128xf32>
    %c8 = arith.constant 8 : index
    %123 = memref.load %arg1[%c8] : memref<31xf32, #tpu.memory_space<smem>>
    %124 = vector.broadcast %123 : f32 to vector<1x128xf32>
    %125 = arith.mulf %124, %0 : vector<1x128xf32>
    %c18 = arith.constant 18 : index
    %126 = memref.load %arg1[%c18] : memref<31xf32, #tpu.memory_space<smem>>
    %127 = vector.broadcast %126 : f32 to vector<1x128xf32>
    %128 = arith.addf %125, %127 : vector<1x128xf32>
    %129 = arith.negf %128 : vector<1x128xf32>
    %130 = math.exp %129 : vector<1x128xf32>
    %cst_9 = arith.constant 1.000000e+00 : f32
    %131 = vector.broadcast %cst_9 : f32 to vector<1x128xf32>
    %132 = arith.addf %131, %130 : vector<1x128xf32>
    %133 = arith.divf %131, %132 : vector<1x128xf32>
    %c28 = arith.constant 28 : index
    %134 = memref.load %arg1[%c28] : memref<31xf32, #tpu.memory_space<smem>>
    %135 = vector.broadcast %134 : f32 to vector<1x128xf32>
    %136 = arith.mulf %135, %133 : vector<1x128xf32>
    %137 = arith.addf %122, %136 : vector<1x128xf32>
    %c9 = arith.constant 9 : index
    %138 = memref.load %arg1[%c9] : memref<31xf32, #tpu.memory_space<smem>>
    %139 = vector.broadcast %138 : f32 to vector<1x128xf32>
    %140 = arith.mulf %139, %0 : vector<1x128xf32>
    %c19 = arith.constant 19 : index
    %141 = memref.load %arg1[%c19] : memref<31xf32, #tpu.memory_space<smem>>
    %142 = vector.broadcast %141 : f32 to vector<1x128xf32>
    %143 = arith.addf %140, %142 : vector<1x128xf32>
    %144 = arith.negf %143 : vector<1x128xf32>
    %145 = math.exp %144 : vector<1x128xf32>
    %cst_10 = arith.constant 1.000000e+00 : f32
    %146 = vector.broadcast %cst_10 : f32 to vector<1x128xf32>
    %147 = arith.addf %146, %145 : vector<1x128xf32>
    %148 = arith.divf %146, %147 : vector<1x128xf32>
    %c29 = arith.constant 29 : index
    %149 = memref.load %arg1[%c29] : memref<31xf32, #tpu.memory_space<smem>>
    %150 = vector.broadcast %149 : f32 to vector<1x128xf32>
    %151 = arith.mulf %150, %148 : vector<1x128xf32>
    %152 = arith.addf %137, %151 : vector<1x128xf32>
    %c0_11 = arith.constant 0 : index
    %c0_12 = arith.constant 0 : index
    %153 = vector.load %arg3[%c0_11, %c0_12] : memref<1x128xf32, #tpu.memory_space<vmem>>, vector<1x128xf32>
    tpu.vector_store %arg3[%c0_11, %c0_12], %152 {strides = array<i32>} : memref<1x128xf32, #tpu.memory_space<vmem>>, vector<1x128xf32>,
    return
  }
  func.func @transform_0(%arg0: i32) -> i32 {
    %c0_i32 = arith.constant 0 : i32
    %c0_i32_0 = arith.constant 0 : i32
    return %c0_i32 : i32
  }
  func.func @transform_1(%arg0: i32) -> (i32, i32) {
    %c0_i32 = arith.constant 0 : i32
    %c0_i32_0 = arith.constant 0 : i32
    return %arg0, %c0_i32 : i32, i32
  }
  func.func @transform_2(%arg0: i32) -> (i32, i32) {
    %c0_i32 = arith.constant 0 : i32
    %c0_i32_0 = arith.constant 0 : i32
    return %arg0, %c0_i32 : i32, i32
  }
}

</mosaic_0001>

<bundles_post_ra>
// kernel: net_forward_packed.1
= control target key start
LH: loop header
LB: loop body
LE: loop exit
PB: predicated region body
PF: predicated region fallthrough
CT: control target
= control target key end

     0   :  { %7 = vsyncpa [#allocation3], 0  ;;  %s325_s0 = inlined_call_operand.vmem [shape: f32[31], index: 0, kind: input, shape index: {}]   ;;  %s326_s1 = inlined_call_operand.vmem [shape: f32[1,128], index: 1, kind: input, shape index: {}]   ;;  %s327_s2 = inlined_call_operand.vmem [shape: f32[1,128], index: 2, kind: output, shape index: {}]  }
   0x1   :  { %s14_s11 = sshll.u32 %s325_s0, 4  ;;  %s15_s11 = int_to_ptr.vmem [resolvable:$true] %s14_s11 }
   0x2   :  { %s274_s12 = scalar_lea.vmem %s15_s11, 16  ;;  %p279_p1 = scmp.lt.s32.totalorder %s15_s11, %s15_s11 }
   0x3   :  { %p275_p0 = scmp.ne.s32.totalorder %s15_s11, %s274_s12  ;;  %p280_p2 = scmp.lt.s32.totalorder %s274_s12, %s274_s12 }
   0x5   :  { %p281_p3 = por %p280_p2, %p279_p1 }
   0x7   :  { %p282_p4 = pnand %p281_p3, %p275_p0 }
   0x9   :  { %285 = shalt.err (!%p282_p4)
}
   0xa   :  { %s288_s13 = smov [#allocation2]  }
   0xb   :  { %17 = dma.vmem_to_smem %s15_s11, 16, %s288_s13, [#allocation3]  }
   0xc   :  { %286 = dma.done.wait [#allocation3], 16  }
   0xd   :  { %287 = vsyncadd [#allocation3], 4294967280 }
   0xe   :  { %23 = sfence }
   0xf   :  { %s27_s14 = sld [smem:[#allocation2]]  ;;  %v310_v0 = vld [vmem:[%s326_s1] sm:$0x1] }
  0x10   :  { %s194_s15 = sld [smem:[#allocation2 + $0xa]] }
  0x11   :  { %s197_s16 = sld [smem:[#allocation2 + $0x1]] }
  0x12   :  { %s198_s0 = sld [smem:[#allocation2 + $0xb]] }
  0x13   :  { %s201_s19 = sld [smem:[#allocation2 + $0x2]] }
  0x14   :  { %s202_s20 = sld [smem:[#allocation2 + $0xc]] }
  0x15   :  { %v28_v1 = vstv %s27_s14  ;;  %s205_s21 = sld [smem:[#allocation2 + $0x3]] }
  0x16   :  { %v29_v2 = vmul.f32 %v28_v1, %v310_v0  ;;  %v31_v3 = vstv %s194_s15  ;;  %s206_s22 = sld [smem:[#allocation2 + $0xd]] }
  0x17   :  { %v44_v5 = vstv %s197_s16  ;;  %s209_s23 = sld [smem:[#allocation2 + $0x4]] }
  0x18   :  { %v32_v4 = vadd.f32 %v31_v3, %v29_v2  ;;  %v45_v6 = vmul.f32 %v44_v5, %v310_v0  ;;  %v47_v7 = vstv %s198_s0  ;;  %s210_s1 = sld [smem:[#allocation2 + $0xe]] }
  0x19   :  { %v60_v10 = vstv %s201_s19  ;;  %s213_s24 = sld [smem:[#allocation2 + $0x5]] }
  0x1a   :  { %v195_v8 = vmul.f32 -1.442695, %v32_v4  ;;  %v48_v9 = vadd.f32 %v47_v7, %v45_v6  ;;  %v61_v11 = vmul.f32 %v60_v10, %v310_v0  ;;  %v63_v12 = vstv %s202_s20  ;;  %s214_s25 = sld [smem:[#allocation2 + $0xf]] }
  0x1b   :  { %v76_v15 = vstv %s205_s21  ;;  %s217_s26 = sld [smem:[#allocation2 + $0x6]] }
  0x1c   :  { %234 = vpow2.f32 %v195_v8  ;;  %v199_v13 = vmul.f32 -1.442695, %v48_v9  ;;  %v64_v14 = vadd.f32 %v63_v12, %v61_v11  ;;  %v77_v16 = vmul.f32 %v76_v15, %v310_v0  ;;  %s218_s27 = sld [smem:[#allocation2 + $0x10]] }
  0x1d   :  { %v79_v17 = vstv %s206_s22  ;;  %v92_v20 = vstv %s209_s23  ;;  %s221_s28 = sld [smem:[#allocation2 + $0x7]] }
  0x1e   :  { %236 = vpow2.f32 %v199_v13  ;;  %v203_v18 = vmul.f32 -1.442695, %v64_v14  ;;  %v80_v19 = vadd.f32 %v79_v17, %v77_v16  ;;  %v93_v21 = vmul.f32 %v92_v20, %v310_v0  ;;  %s222_s29 = sld [smem:[#allocation2 + $0x11]] }
  0x1f   :  { %v95_v22 = vstv %s210_s1  ;;  %v108_v25 = vstv %s213_s24  ;;  %s225_s30 = sld [smem:[#allocation2 + $0x8]] }
  0x20   :  { %238 = vpow2.f32 %v203_v18  ;;  %v207_v23 = vmul.f32 -1.442695, %v80_v19  ;;  %v96_v24 = vadd.f32 %v95_v22, %v93_v21  ;;  %v109_v26 = vmul.f32 %v108_v25, %v310_v0  ;;  %s226_s3 = sld [smem:[#allocation2 + $0x12]] }
  0x21   :  { %v111_v27 = vstv %s214_s25  ;;  %v124_v30 = vstv %s217_s26  ;;  %s229_s4 = sld [smem:[#allocation2 + $0x9]] }
  0x22   :  { %240 = vpow2.f32 %v207_v23  ;;  %v211_v28 = vmul.f32 -1.442695, %v96_v24  ;;  %v112_v29 = vadd.f32 %v111_v27, %v109_v26  ;;  %v125_v31 = vmul.f32 %v124_v30, %v310_v0  ;;  %s230_s5 = sld [smem:[#allocation2 + $0x13]] }
  0x23   :  { %v127_v32 = vstv %s218_s27  ;;  %v140_v37 = vstv %s221_s28  ;;  %s196_s6 = sld [smem:[#allocation2 + $0x14]] }
  0x24   :  { %242 = vpow2.f32 %v211_v28  ;;  %v215_v34 = vmul.f32 -1.442695, %v112_v29  ;;  %v128_v36 = vadd.f32 %v127_v32, %v125_v31  ;;  %v141_v38 = vmul.f32 %v140_v37, %v310_v0  ;;  %s193_s7 = sld [smem:[#allocation2 + $0x1e]] }
  0x25   :  { %v143_v39 = vstv %s222_s29  ;;  %v156_v44 = vstv %s225_s30  ;;  %s200_s8 = sld [smem:[#allocation2 + $0x15]] }
  0x26   :  { %244 = vpow2.f32 %v215_v34  ;;  %v219_v41 = vmul.f32 -1.442695, %v128_v36  ;;  %v144_v43 = vadd.f32 %v143_v39, %v141_v38  ;;  %v157_v45 = vmul.f32 %v156_v44, %v310_v0  ;;  %s204_s9 = sld [smem:[#allocation2 + $0x16]] }
  0x27   :  { %v159_v46 = vstv %s226_s3  ;;  %v172_v51 = vstv %s229_s4  ;;  %s208_s10 = sld [smem:[#allocation2 + $0x17]] }
  0x28   :  { %v223_v48 = vmul.f32 -1.442695, %v144_v43  ;;  %v160_v50 = vadd.f32 %v159_v46, %v157_v45  ;;  %v173_v52 = vmul.f32 %v172_v51, %v310_v0  ;;  %v175_v53 = vstv %s230_s5  ;;  %s212_s11 = sld [smem:[#allocation2 + $0x18]] }
  0x29   :  { %v235_v33 = vpop.eup %234  ;;  %v40_v61 = vstv %s196_s6  ;;  %s216_s12 = sld [smem:[#allocation2 + $0x19]] }
  0x2a   :  { %v36_v35 = vadd.f32 1.0, %v235_v33  ;;  %v227_v55 = vmul.f32 -1.442695, %v160_v50  ;;  %v176_v57 = vadd.f32 %v175_v53, %v173_v52  ;;  %v26_v0 = vstv %s193_s7  ;;  %s220_s13 = sld [smem:[#allocation2 + $0x1a]] }
  0x2b   :  { %v237_v40 = vpop.eup %236  ;;  %v56_v3 = vstv %s200_s8  ;;  %s224_s14 = sld [smem:[#allocation2 + $0x1b]] }
  0x2c   :  { %246 = vrcp.f32 %v36_v35  ;;  %v52_v42 = vadd.f32 1.0, %v237_v40  ;;  %v231_v59 = vmul.f32 -1.442695, %v176_v57  ;;  %v72_v9 = vstv %s204_s9  ;;  %s228_s15 = sld [smem:[#allocation2 + $0x1c]] }
  0x2d   :  { %248 = vpow2.f32 %v219_v41  ;;  %v239_v47 = vpop.eup %238  ;;  %v88_v15 = vstv %s208_s10  ;;  %s232_s16 = sld [smem:[#allocation2 + $0x1d]] }
  0x2e   :  { %250 = vrcp.f32 %v52_v42  ;;  %v68_v49 = vadd.f32 1.0, %v239_v47  ;;  %v104_v21 = vstv %s212_s11 }
  0x2f   :  { %252 = vpow2.f32 %v223_v48  ;;  %v241_v54 = vpop.eup %240  ;;  %v120_v27 = vstv %s216_s12 }
  0x30   :  { %254 = vrcp.f32 %v68_v49  ;;  %v84_v56 = vadd.f32 1.0, %v241_v54  ;;  %v136_v31 = vstv %s220_s13 }
  0x31   :  { %256 = vpow2.f32 %v227_v55  ;;  %v243_v58 = vpop.eup %242  ;;  %v152_v35 = vstv %s224_s14 }
  0x32   :  { %258 = vrcp.f32 %v84_v56  ;;  %v100_v60 = vadd.f32 1.0, %v243_v58  ;;  %v168_v39 = vstv %s228_s15 }
  0x33   :  { %260 = vpow2.f32 %v231_v59  ;;  %v245_v62 = vpop.eup %244  ;;  %v184_v43 = vstv %s232_s16 }
  0x34   :  { %262 = vrcp.f32 %v100_v60  ;;  %v116_v1 = vadd.f32 1.0, %v245_v62 }
  0x36   :  { %264 = vrcp.f32 %v116_v1 }
  0x39   :  { %v247_v63 = vpop.eup %246 }
  0x3a   :  { %v41_v2 = vmul.f32 %v247_v63, %v40_v61  ;;  %v249_v4 = vpop.eup %248 }
  0x3b   :  { %v251_v5 = vpop.eup %250  ;;  %v132_v7 = vadd.f32 1.0, %v249_v4 }
  0x3c   :  { %v42_v6 = vadd.f32 %v41_v2, %v26_v0  ;;  %v57_v8 = vmul.f32 %v251_v5, %v56_v3  ;;  %v253_v10 = vpop.eup %252 }
  0x3d   :  { %266 = vrcp.f32 %v132_v7  ;;  %v255_v11 = vpop.eup %254  ;;  %v148_v13 = vadd.f32 1.0, %v253_v10 }
  0x3e   :  { %v58_v12 = vadd.f32 %v57_v8, %v42_v6  ;;  %v73_v14 = vmul.f32 %v255_v11, %v72_v9  ;;  %v257_v16 = vpop.eup %256 }
  0x3f   :  { %268 = vrcp.f32 %v148_v13  ;;  %v259_v17 = vpop.eup %258  ;;  %v164_v19 = vadd.f32 1.0, %v257_v16 }
  0x40   :  { %v74_v18 = vadd.f32 %v73_v14, %v58_v12  ;;  %v89_v20 = vmul.f32 %v259_v17, %v88_v15  ;;  %v261_v22 = vpop.eup %260 }
  0x41   :  { %270 = vrcp.f32 %v164_v19  ;;  %v263_v23 = vpop.eup %262  ;;  %v180_v25 = vadd.f32 1.0, %v261_v22 }
  0x42   :  { %v90_v24 = vadd.f32 %v89_v20, %v74_v18  ;;  %v105_v26 = vmul.f32 %v263_v23, %v104_v21 }
  0x43   :  { %272 = vrcp.f32 %v180_v25  ;;  %v265_v28 = vpop.eup %264 }
  0x44   :  { %v106_v29 = vadd.f32 %v105_v26, %v90_v24  ;;  %v121_v30 = vmul.f32 %v265_v28, %v120_v27 }
  0x46   :  { %v122_v33 = vadd.f32 %v121_v30, %v106_v29 }
  0x4a   :  { %v267_v32 = vpop.eup %266 }
  0x4b   :  { %v137_v34 = vmul.f32 %v267_v32, %v136_v31 }
  0x4c   :  { %v269_v36 = vpop.eup %268 }
  0x4d   :  { %v138_v37 = vadd.f32 %v137_v34, %v122_v33  ;;  %v153_v38 = vmul.f32 %v269_v36, %v152_v35 }
  0x4e   :  { %v271_v40 = vpop.eup %270 }
  0x4f   :  { %v154_v41 = vadd.f32 %v153_v38, %v138_v37  ;;  %v169_v42 = vmul.f32 %v271_v40, %v168_v39 }
  0x50   :  { %v273_v44 = vpop.eup %272 }
  0x51   :  { %v170_v45 = vadd.f32 %v169_v42, %v154_v41  ;;  %v185_v46 = vmul.f32 %v273_v44, %v184_v43 }
  0x53   :  { %v186_v47 = vadd.f32 %v185_v46, %v170_v45 }
  0x55   :  { %187 = vst [vmem:[%s327_s2] sm:$0x1] %v186_v47 }
  0x56   :  { %192 = vsyncpa [#allocation3], 1 }

</bundles_post_ra>
